<compile_context>
chip_gen: v7x
topology: tpu7x:2x2x1
jax: 0.10.0
libtpu: 0.0.40
codegen_flags: <defaults>
</compile_context>

<pallas_src>
import numpy as np
import jax
import jax.numpy as jnp
from jax.experimental import pallas as pl
from jax.experimental.pallas import tpu as pltpu

MODEL_NAMES = ("ModelA", "ModelB", "ModelC", "ModelD")


def _ensemble_kernel(x_ref, w_ref, b_ref, out_ref):
    """One fused step for the whole ensemble.

    x_ref:   (B, D)    bf16  shared flattened input
    w_ref:   (D, NP)   bf16  lanes [0,N)   = all member heads, member-major
                             lanes [N,N+M) = per-member mean columns
                             lanes >= N+M  = zero padding (lane-dense to 128)
    b_ref:   (1, NP)   f32   matching packed biases
    out_ref: (B+1, NP) f32   rows [0,B) = sigmoid(logits)            (preds)
                             row B      = sigmoid(batch-mean logits) (scores
                                          live in lanes [N, N+M); rest junk)
    """
    B = x_ref.shape[0]

    # One MXU matmul covers every member head AND the per-member mean columns.
    # f32 accumulation; all following elementwise math stays f32.
    logits = jnp.dot(x_ref[...], w_ref[...],
                     preferred_element_type=jnp.float32) + b_ref[...]   # (B, NP)

    # preds[name] = sigmoid(pred): one lane-dense vectorized store.
    out_ref[0:B, :] = jax.nn.sigmoid(logits)

    # Lanes [N, N+M) of `logits` are already each member's per-row mean over
    # its O outputs, so the batch mean of those lanes is the mean over all
    # B*O member logits.  Sublane reduce + sigmoid -> scores row.
    batch_mean = jnp.sum(logits, axis=0, keepdims=True) * (1.0 / B)     # (1, NP)
    out_ref[B:B + 1, :] = jax.nn.sigmoid(batch_mean)


class PallasEnsemble:
    """Ensemble of M synthetic linear members fused into one Pallas call."""

    def __init__(self, w_stack, b_stack, names=MODEL_NAMES):
        w_np = np.asarray(w_stack, dtype=np.float32)   # (M, D, O)
        b_np = np.asarray(b_stack, dtype=np.float32)   # (M, 1, O)
        M, D, O = w_np.shape
        N = M * O
        NP = max(128, -(-(N + M) // 128) * 128)        # lane-dense padding
        self.names = tuple(names)
        self.M, self.D, self.O, self.N, self.NP = M, D, O, N, NP

        # ---- One-time packing (weights are static): no transpose/convert
        # ---- HLOs on the per-call path.
        w_packed = np.zeros((D, NP), np.float32)
        w_packed[:, :N] = np.transpose(w_np, (1, 0, 2)).reshape(D, N)
        w_packed[:, N:N + M] = np.mean(w_np, axis=2).T          # mean columns
        b_packed = np.zeros((1, NP), np.float32)
        b_packed[0, :N] = np.transpose(b_np, (1, 0, 2)).reshape(N)
        b_packed[0, N:N + M] = np.mean(b_np, axis=2).reshape(M)

        # bf16 MXU operands (f32 accumulation in-kernel); bias stays f32.
        self.w_packed = jnp.asarray(w_packed).astype(jnp.bfloat16)
        self.b_packed = jnp.asarray(b_packed)

        self._forward = jax.jit(self._make_forward())

    def _make_forward(self):
        D, NP = self.D, self.NP

        def fwd(x, w, b):
            B = x.shape[0]
            x_flat = x.reshape(B, D).astype(jnp.bfloat16)

            flops = 2 * B * D * NP + 3 * (B + 1) * NP
            bytes_accessed = (2 * B * D) + (2 * D * NP) + (4 * NP) \
                             + (4 * (B + 1) * NP)

            # NOTE: every block_shape below equals the full array shape, which
            # is what satisfies the (8,128) tiling rule at these tiny sizes.
            # If a grid axis over B or lanes is ever added, pad those dims to
            # multiples of (8, 128) first.
            return pl.pallas_call(
                _ensemble_kernel,
                out_shape=jax.ShapeDtypeStruct((B + 1, NP), jnp.float32),
                grid_spec=pltpu.PrefetchScalarGridSpec(
                    num_scalar_prefetch=0,
                    grid=(1,),                        # single fused step
                    in_specs=[
                        pl.BlockSpec((B, D), lambda i: (0, 0)),    # x
                        pl.BlockSpec((D, NP), lambda i: (0, 0)),   # packed W
                        pl.BlockSpec((1, NP), lambda i: (0, 0)),   # packed b
                    ],
                    out_specs=pl.BlockSpec((B + 1, NP), lambda i: (0, 0)),
                ),
                # TODO(synk): at real image-model D (1e5..1e6) add a K grid
                # axis + f32 VMEM accumulator (pl.when init/finalize), size
                # double-buffered bf16 tiles against the *scoped* VMEM limit
                # (v5e 16 MiB default, v7x 32 MiB default / 64 MiB physical),
                # set vmem_limit_bytes explicitly, and mark a leading batch /
                # output-tile axis "parallel" so v7x megacore engages.
                compiler_params=pltpu.CompilerParams(
                    dimension_semantics=("arbitrary",)),
                cost_estimate=pl.CostEstimate(
                    flops=flops,
                    transcendentals=(B + 1) * NP,
                    bytes_accessed=bytes_accessed),
            )(x_flat, w, b)

        return fwd

    def forward_raw(self, x):
        """Run the fused kernel once; returns the (B+1, NP) device slab."""
        return self._forward(x, self.w_packed, self.b_packed)

    def postprocess(self, out_slab):
        """One device->host transfer + numpy slicing -> (scores, preds)."""
        out = np.asarray(out_slab)                    # single transfer
        B = out.shape[0] - 1
        O, N = self.O, self.N
        scores = {name: out[B, N + m] for m, name in enumerate(self.names)}
        preds = {name: out[:B, m * O:(m + 1) * O].reshape(-1)
                 for m, name in enumerate(self.names)}
        return scores, preds

    def __call__(self, x):
        return self.postprocess(jax.block_until_ready(self.forward_raw(x)))


if __name__ == "__main__":
    # Small deterministic shapes consistent with an image-classifier ensemble.
    B, C, H, W = 2, 4, 16, 16
    M = 4                        # len(self.weightage) == 4 members
    D = C * H * W                # flattened feature dim = 1024
    O = 8                        # per-member output dim

    key = jax.random.PRNGKey(0)
    kx, kw, kb = jax.random.split(key, 3)
    x = jax.random.normal(kx, (B, C, H, W), dtype=jnp.float32)
    w_stack = jax.random.normal(kw, (M, D, O), dtype=jnp.float32) * 0.02
    b_stack = jax.random.normal(kb, (M, 1, O), dtype=jnp.float32) * 0.1

    ens = PallasEnsemble(w_stack, b_stack)

    out_slab = ens.forward_raw(x)                 # one pallas_call
    out_slab = jax.block_until_ready(out_slab)
    scores, preds = ens.postprocess(out_slab)

    # Pure-numpy f32 reference.  Tolerance is loosened vs an all-f32 path
    # because the MXU operands are bf16 (accumulation stays f32).
    def sigmoid(v):
        return 1.0 / (1.0 + np.exp(-v))

    x_flat = np.asarray(x).reshape(B, D)
    w_np = np.asarray(w_stack)
    b_np = np.asarray(b_stack)
    for i, name in enumerate(MODEL_NAMES):
        logits_ref = x_flat @ w_np[i] + b_np[i]           # (B, O)
        assert np.allclose(preds[name], sigmoid(logits_ref).reshape(-1),
                           atol=5e-3), name
        assert np.allclose(scores[name], sigmoid(logits_ref.mean()),
                           atol=5e-3), name

    print("KERNEL_OK")
</pallas_src>

<mosaic_0001>
module attributes {stable_mosaic.version = 11 : i64} {
  func.func @_ensemble_kernel(%arg0: i32, %arg1: memref<2x1024xbf16, #tpu.memory_space<vmem>>, %arg2: memref<1024x128xbf16, #tpu.memory_space<vmem>>, %arg3: memref<1x128xf32, #tpu.memory_space<vmem>>, %arg4: memref<3x128xf32, #tpu.memory_space<vmem>>) attributes {dimension_semantics = [#tpu.dimension_semantics<arbitrary>], iteration_bounds = array<i64: 1>, scalar_prefetch = 0 : i64, scratch_operands = 0 : i64, tpu.core_type = #tpu.core_type<tc>, window_params = [{pipeline_mode = #tpu.pipeline_mode<synchronous>, transform_indices = @transform_0, window_bounds = array<i64: 2, 1024>}, {pipeline_mode = #tpu.pipeline_mode<synchronous>, transform_indices = @transform_1, window_bounds = array<i64: 1024, 128>}, {pipeline_mode = #tpu.pipeline_mode<synchronous>, transform_indices = @transform_2, window_bounds = array<i64: 1, 128>}, {pipeline_mode = #tpu.pipeline_mode<synchronous>, transform_indices = @transform_3, window_bounds = array<i64: 3, 128>}]} {
    %c0 = arith.constant 0 : index
    %c0_0 = arith.constant 0 : index
    %0 = vector.load %arg1[%c0, %c0_0] : memref<2x1024xbf16, #tpu.memory_space<vmem>>, vector<2x1024xbf16>
    %c0_1 = arith.constant 0 : index
    %c0_2 = arith.constant 0 : index
    %1 = vector.load %arg2[%c0_1, %c0_2] : memref<1024x128xbf16, #tpu.memory_space<vmem>>, vector<1024x128xbf16>
    %cst = arith.constant dense<0.000000e+00> : vector<2x128xf32>
    %2 = tpu.matmul %0, %1, %cst {dimension_numbers = #tpu.dot_dimension_numbers<[1], [0], [0], [1], [0, 0, 1, 1], [], []>} : vector<2x1024xbf16>, vector<1024x128xbf16>, vector<2x128xf32> -> vector<2x128xf32>
    %c0_3 = arith.constant 0 : index
    %c0_4 = arith.constant 0 : index
    %3 = vector.load %arg3[%c0_3, %c0_4] : memref<1x128xf32, #tpu.memory_space<vmem>>, vector<1x128xf32>
    %4 = vector.broadcast %3 : vector<1x128xf32> to vector<2x128xf32>
    %5 = arith.addf %2, %4 : vector<2x128xf32>
    %6 = arith.negf %5 : vector<2x128xf32>
    %7 = math.exp %6 : vector<2x128xf32>
    %cst_5 = arith.constant 1.000000e+00 : f32
    %8 = vector.broadcast %cst_5 : f32 to vector<2x128xf32>
    %9 = arith.addf %8, %7 : vector<2x128xf32>
    %10 = arith.divf %8, %9 : vector<2x128xf32>
    %c0_6 = arith.constant 0 : index
    %c0_7 = arith.constant 0 : index
    %11 = vector.load %arg4[%c0_6, %c0_7] : memref<3x128xf32, #tpu.memory_space<vmem>>, vector<2x128xf32>
    tpu.vector_store %arg4[%c0_6, %c0_7], %10 {strides = array<i32>} : memref<3x128xf32, #tpu.memory_space<vmem>>, vector<2x128xf32>,
    %cst_8 = arith.constant dense<0.000000e+00> : vector<128xf32>
    %12 = vector.multi_reduction <add>, %5, %cst_8 [0] : vector<2x128xf32> to vector<128xf32>
    %13 = vector.shape_cast %12 : vector<128xf32> to vector<1x128xf32>
    %cst_9 = arith.constant 5.000000e-01 : f32
    %14 = vector.broadcast %cst_9 : f32 to vector<1x128xf32>
    %15 = arith.mulf %13, %14 : vector<1x128xf32>
    %16 = arith.negf %15 : vector<1x128xf32>
    %17 = math.exp %16 : vector<1x128xf32>
    %cst_10 = arith.constant 1.000000e+00 : f32
    %18 = vector.broadcast %cst_10 : f32 to vector<1x128xf32>
    %19 = arith.addf %18, %17 : vector<1x128xf32>
    %20 = arith.divf %18, %19 : vector<1x128xf32>
    %c2 = arith.constant 2 : index
    %c0_11 = arith.constant 0 : index
    %21 = vector.load %arg4[%c2, %c0_11] : memref<3x128xf32, #tpu.memory_space<vmem>>, vector<1x128xf32>
    tpu.vector_store %arg4[%c2, %c0_11], %20 {strides = array<i32>} : memref<3x128xf32, #tpu.memory_space<vmem>>, vector<1x128xf32>,
    return
  }
  func.func @transform_0(%arg0: i32) -> (i32, i32) {
    %c0_i32 = arith.constant 0 : i32
    %c0_i32_0 = arith.constant 0 : i32
    %c0_i32_1 = arith.constant 0 : i32
    return %c0_i32, %c0_i32_0 : i32, i32
  }
  func.func @transform_1(%arg0: i32) -> (i32, i32) {
    %c0_i32 = arith.constant 0 : i32
    %c0_i32_0 = arith.constant 0 : i32
    %c0_i32_1 = arith.constant 0 : i32
    return %c0_i32, %c0_i32_0 : i32, i32
  }
  func.func @transform_2(%arg0: i32) -> (i32, i32) {
    %c0_i32 = arith.constant 0 : i32
    %c0_i32_0 = arith.constant 0 : i32
    %c0_i32_1 = arith.constant 0 : i32
    return %c0_i32, %c0_i32_0 : i32, i32
  }
  func.func @transform_3(%arg0: i32) -> (i32, i32) {
    %c0_i32 = arith.constant 0 : i32
    %c0_i32_0 = arith.constant 0 : i32
    %c0_i32_1 = arith.constant 0 : i32
    return %c0_i32, %c0_i32_0 : i32, i32
  }
}

</mosaic_0001>

<bundles_post_ra>
// kernel: fwd.1
= control target key start
LH: loop header
LB: loop body
LE: loop exit
PB: predicated region body
PF: predicated region fallthrough
CT: control target
= control target key end

     0   :  { %8 = vsyncpa [#allocation3], 0  ;;  %s1155_s0 = inlined_call_operand.vmem [shape: bf16[2,1024], index: 0, kind: input, shape index: {}]   ;;  %s1156_s1 = inlined_call_operand.hbm [shape: bf16[1024,128], index: 1, kind: input, shape index: {}]   ;;  %s1157_s2 = inlined_call_operand.vmem [shape: f32[1,128], index: 2, kind: input, shape index: {}]   ;;  %s1158_s3 = inlined_call_operand.hbm [shape: f32[3,128], index: 3, kind: output, shape index: {}]  }
   0x1   :  { %9 = vsyncpa [#allocation4], 0  ;;  %s1087_s12 = smov [#allocation2]   ;;  %s1039_s16 = scalar_lea.hbm %s1156_s1, 8192 }
   0x2   :  { %s17_s13 = sshll.u32 %s1087_s12, 4  ;;  %p1040_p0 = scmp.ne.s32.totalorder %s1156_s1, %s1039_s16  ;;  %s18_s13 = int_to_ptr.vmem [resolvable:$true] %s17_s13 }
   0x3   :  { %p1043_p1 = scmp.lt.u32.totalorder %s1039_s16, %s1156_s1 }
   0x5   :  { %p1045_p2 = pnand %p1043_p1, %p1040_p0 }
   0x7   :  { %1048 = shalt.err (!%p1045_p2)
}
   0x8   :  { %s1049_s21 = scalar_lea.vmem %s18_s13, 8192  ;;  %p1054_p4 = scmp.lt.s32.totalorder %s18_s13, %s18_s13 }
   0x9   :  { %p1050_p3 = scmp.ne.s32.totalorder %s18_s13, %s1049_s21  ;;  %p1055_p5 = scmp.lt.s32.totalorder %s1049_s21, %s1049_s21 }
   0xb   :  { %p1056_p6 = por %p1055_p5, %p1054_p4 }
   0xd   :  { %p1057_p7 = pnand %p1056_p6, %p1050_p3 }
   0xf   :  { %1060 = shalt.err (!%p1057_p7)
}
  0x10   :  { %s1088_s22 = smov 64   ;;  %s1089_s23 = smov 4  }
  0x11   :  { %23 = dma.hbm_to_vmem [thread:$0]  %s1156_s1, 8192, %s18_s13, [#allocation3], %s1088_s22, %s1088_s22, %s1089_s23  }
  0x12   :  { %1083 = dma.done.wait [#allocation3], 8192  }
  0x13   :  { %1084 = vsyncadd [#allocation3], 4294959104  ;;  %v966_v0 = vld [vmem:[#allocation2 + $0x40] sm:$0xff]   ;;  %v970_v4 = vld [vmem:[#allocation2 + $0x48] sm:$0xff]   ;;  %v1090_v22 = vmov 1966171168   ;;  %v171_v24 = vlaneseq }
  0x14   :  { %v967_v1 = vld [vmem:[#allocation2 + $0xc0] sm:$0xff]   ;;  %873 = vmatprep.subr.bf16.mxu0 %v966_v0  ;;  %v971_v5 = vld [vmem:[#allocation2 + $0xc8] sm:$0xff]   ;;  %v974_v8 = vld [vmem:[#allocation2 + $0x50] sm:$0xff]   ;;  %v169_v23 = vunpack.c.l.s4 %v1090_v22  ;;  %vm775_vm0 = vcmask 1041408  }
  0x15   :  { %v968_v2 = vld [vmem:[#allocation2] sm:$0xff]   ;;  %895 = vmatprep.subr.bf16.mxu1 %v967_v1  ;;  %v972_v6 = vld [vmem:[#allocation2 + $0x8] sm:$0xff]   ;;  %v975_v9 = vld [vmem:[#allocation2 + $0xd0] sm:$0xff]   ;;  %v172_v30 = vshrl.u32 %v171_v24, 7 }
  0x16   :  { %v969_v3 = vld [vmem:[#allocation2 + $0x80] sm:$0xff]   ;;  %874 = vmatpush3.bf16.msra.mxu0 %v968_v2  ;;  %v973_v7 = vld [vmem:[#allocation2 + $0x88] sm:$0xff]   ;;  %v976_v10 = vld [vmem:[#allocation2 + $0x10] sm:$0xff]   ;;  %v170_v29 = vunpack.c.0.s8 %v169_v23 }
  0x17   :  { %896 = vmatpush3.bf16.msra.mxu1 %v969_v3  ;;  %875 = vmatprep.subr.bf16.mxu0 %v970_v4  ;;  %v977_v11 = vld [vmem:[#allocation2 + $0x90] sm:$0xff]   ;;  %v978_v12 = vld [vmem:[#allocation2 + $0x58] sm:$0xff]   ;;  %v982_v16 = vld [vmem:[#allocation2 + $0x60] sm:$0xff]  }
  0x18   :  { %897 = vmatprep.subr.bf16.mxu1 %v971_v5  ;;  %v979_v13 = vld [vmem:[#allocation2 + $0xd8] sm:$0xff]   ;;  %v983_v17 = vld [vmem:[#allocation2 + $0xe0] sm:$0xff]   ;;  %v986_v20 = vld [vmem:[#allocation2 + $0x68] sm:$0xff]   ;;  %v1124_v35 = vsub.s32 %v170_v29, %v172_v30 }
  0x19   :  { %v980_v14 = vld [vmem:[#allocation2 + $0x18] sm:$0xff]   ;;  %v984_v18 = vld [vmem:[#allocation2 + $0x20] sm:$0xff]   ;;  %v987_v21 = vld [vmem:[#allocation2 + $0xe8] sm:$0xff]  }
  0x1a   :  { %876 = vmatpush3.bf16.msra.mxu0 %v972_v6  ;;  %v981_v15 = vld [vmem:[#allocation2 + $0x98] sm:$0xff]   ;;  %v985_v19 = vld [vmem:[#allocation2 + $0xa0] sm:$0xff]   ;;  %v988_v25 = vld [vmem:[#allocation2 + $0x28] sm:$0xff]  }
  0x1b   :  { %898 = vmatpush3.bf16.msra.mxu1 %v973_v7  ;;  %877 = vmatprep.subr.bf16.mxu0 %v974_v8  ;;  %v989_v26 = vld [vmem:[#allocation2 + $0xa8] sm:$0xff]   ;;  %v990_v27 = vld [vmem:[#allocation2 + $0x70] sm:$0xff]   ;;  %v994_v33 = vld [vmem:[#allocation2 + $0x78] sm:$0xff]  }
  0x1c   :  { %899 = vmatprep.subr.bf16.mxu1 %v975_v9  ;;  %v991_v28 = vld [vmem:[#allocation2 + $0xf0] sm:$0xff]   ;;  %v995_v34 = vld [vmem:[#allocation2 + $0xf8] sm:$0xff]   ;;  %v30_v38 = vld [vmem:[%s1155_s0] sm:$0xff] }
  0x1d   :  { %v992_v31 = vld [vmem:[#allocation2 + $0x30] sm:$0xff]   ;;  %v996_v36 = vld [vmem:[#allocation2 + $0x38] sm:$0xff]   ;;  %v167_v39 = vcombine.high %v30_v38, %v30_v38  ;;  %v174_v40 = vrot.slane %v30_v38, %v1124_v35  ;;  %v999_v41 = vld [vmem:[#allocation2 + $0x140] sm:$0xff]  }
  0x1e   :  { %878 = vmatpush3.bf16.msra.mxu0 %v976_v10  ;;  %v993_v32 = vld [vmem:[#allocation2 + $0xb0] sm:$0xff]   ;;  %v997_v37 = vld [vmem:[#allocation2 + $0xb8] sm:$0xff]   ;;  %v1000_v42 = vld [vmem:[#allocation2 + $0x1c0] sm:$0xff]  }
  0x1f   :  { %900 = vmatpush3.bf16.msra.mxu1 %v977_v11  ;;  %879 = vmatprep.subr.bf16.mxu0 %v978_v12  ;;  %v182_v43 = vcombine.high %v174_v40, %v174_v40  ;;  %v190_v44 = vrot.slane %v174_v40, %v1124_v35  ;;  %v1132_v45 = vrot.slane %v167_v39, %v1124_v35  ;;  %v1001_v47 = vld [vmem:[#allocation2 + $0x100] sm:$0xff]   ;;  %v1003_v50 = vld [vmem:[#allocation2 + $0x148] sm:$0xff]   ;;  %v1007_v57 = vld [vmem:[#allocation2 + $0x150] sm:$0xff]  }
  0x20   :  { %901 = vmatprep.subr.bf16.mxu1 %v979_v13  ;;  %v1002_v52 = vld [vmem:[#allocation2 + $0x180] sm:$0xff]   ;;  %v1004_v54 = vld [vmem:[#allocation2 + $0x1c8] sm:$0xff]   ;;  %v1008_v59 = vld [vmem:[#allocation2 + $0x1d0] sm:$0xff]  }
  0x21   :  { %v204_v46 = vrot.slane %v182_v43, %v1124_v35  ;;  %v183_v48 = vcombine.high %v1132_v45, %v1132_v45  ;;  %v212_v49 = vcombine.high %v190_v44, %v190_v44  ;;  %v1005_v55 = vld [vmem:[#allocation2 + $0x108] sm:$0xff]   ;;  %v1009_v60 = vld [vmem:[#allocation2 + $0x110] sm:$0xff]   ;;  %v1011_v61 = vld [vmem:[#allocation2 + $0x158] sm:$0xff]  }
  0x22   :  { %880 = vmatpush3.bf16.msra.mxu0 %v980_v14  ;;  %v1006_v58 = vld [vmem:[#allocation2 + $0x188] sm:$0xff]   ;;  %v1010_v62 = vld [vmem:[#allocation2 + $0x190] sm:$0xff]   ;;  %v1012_v63 = vld [vmem:[#allocation2 + $0x1d8] sm:$0xff]  }
  0x23   :  { %902 = vmatpush3.bf16.msra.mxu1 %v981_v15  ;;  %881 = vmatprep.subr.bf16.mxu0 %v982_v16  ;;  %v214_v51 = vcombine.high %v204_v46, %v204_v46  ;;  %v211_v53 = vrot.slane %v183_v48, %v1124_v35  ;;  %v1013_v0 = vld [vmem:[#allocation2 + $0x118] sm:$0xff]   ;;  %v1015_v1 = vld [vmem:[#allocation2 + $0x160] sm:$0xff]   ;;  %v1019_v5 = vld [vmem:[#allocation2 + $0x168] sm:$0xff]  }
  0x24   :  { %903 = vmatprep.subr.bf16.mxu1 %v983_v17  ;;  %640 = vmatprep.mubr.bf16.mxu0 %v204_v46  ;;  %v1014_v2 = vld [vmem:[#allocation2 + $0x198] sm:$0xff]   ;;  %v1016_v3 = vld [vmem:[#allocation2 + $0x1e0] sm:$0xff]   ;;  %v1020_v7 = vld [vmem:[#allocation2 + $0x1e8] sm:$0xff]   ;;  %v197_v17 = vrot.slane %v1132_v45, %v1124_v35 }
  0x25   :  { %680 = vmatprep.mubr.bf16.mxu1 %v214_v51  ;;  %v215_v56 = vcombine.high %v211_v53, %v211_v53  ;;  %v1017_v4 = vld [vmem:[#allocation2 + $0x120] sm:$0xff]   ;;  %v1021_v8 = vld [vmem:[#allocation2 + $0x128] sm:$0xff]   ;;  %v1023_v9 = vld [vmem:[#allocation2 + $0x170] sm:$0xff]  }
  0x26   :  { %882 = vmatpush3.bf16.msra.mxu0 %v984_v18  ;;  %v1018_v6 = vld [vmem:[#allocation2 + $0x1a0] sm:$0xff]   ;;  %v1022_v10 = vld [vmem:[#allocation2 + $0x1a8] sm:$0xff]   ;;  %v1024_v11 = vld [vmem:[#allocation2 + $0x1f0] sm:$0xff]  }
  0x27   :  { %904 = vmatpush3.bf16.msra.mxu1 %v985_v19  ;;  %883 = vmatprep.subr.bf16.mxu0 %v986_v20  ;;  %v1025_v12 = vld [vmem:[#allocation2 + $0x130] sm:$0xff]   ;;  %v1027_v13 = vld [vmem:[#allocation2 + $0x178] sm:$0xff]   ;;  %v213_v19 = vcombine.high %v197_v17, %v197_v17 }
  0x28   :  { %905 = vmatprep.subr.bf16.mxu1 %v987_v21  ;;  %v1026_v14 = vld [vmem:[#allocation2 + $0x1b0] sm:$0xff]   ;;  %v1028_v15 = vld [vmem:[#allocation2 + $0x1f8] sm:$0xff]   ;;  %v806_v21 = vld [vmem:[%s1157_s2] ss:$0 sm:$0xff]  ;;  %s1091_s2 = smov [#allocation5]  }
  0x29   :  { %v1029_v16 = vld [vmem:[#allocation2 + $0x138] sm:$0xff]   ;;  %s797_s28 = sshll.u32 %s1091_s2, 4  ;;  %s798_s28 = int_to_ptr.vmem [resolvable:$true] %s797_s28 }
  0x2a   :  { %884 = vmatpush3.bf16.msra.mxu0 %v988_v25  ;;  %v1030_v18 = vld [vmem:[#allocation2 + $0x1b8] sm:$0xff]   ;;  %s1061_s29 = scalar_lea.vmem %s798_s28, 64  ;;  %p1066_p9 = scmp.lt.s32.totalorder %s798_s28, %s798_s28 }
  0x2b   :  { %906 = vmatpush3.bf16.msra.mxu1 %v989_v26  ;;  %885 = vmatprep.subr.bf16.mxu0 %v990_v27  ;;  %p1062_p8 = scmp.ne.s32.totalorder %s798_s28, %s1061_s29  ;;  %p1067_p10 = scmp.lt.s32.totalorder %s1061_s29, %s1061_s29 }
  0x2c   :  { %907 = vmatprep.subr.bf16.mxu1 %v991_v28 }
  0x2d   :  { %p1068_p11 = por %p1067_p10, %p1066_p9 }
  0x2e   :  { %886 = vmatpush3.bf16.msra.mxu0 %v992_v31 }
  0x2f   :  { %908 = vmatpush3.bf16.msra.mxu1 %v993_v32  ;;  %887 = vmatprep.subr.bf16.mxu0 %v994_v33  ;;  %p1069_p12 = pnand %p1068_p11, %p1062_p8 }
  0x30   :  { %909 = vmatprep.subr.bf16.mxu1 %v995_v34 }
  0x32   :  { %888 = vmatpush3.bf16.msra.mxu0 %v996_v36 }
  0x33   :  { %910 = vmatpush3.bf16.msra.mxu1 %v997_v37  ;;  %917 = vmatprep.subr.bf16.mxu0 %v999_v41 }
  0x34   :  { %939 = vmatprep.subr.bf16.mxu1 %v1000_v42 }
  0x35   :  { %641 = vmatmul.mubr.bf16.vlgmr.msra.gmra.mrb[0].mxu0 %v190_v44 }
  0x36   :  { %918 = vmatpush3.bf16.msra.mxu0 %v1001_v47  ;;  %681 = vmatmul.mubr.bf16.vlgmr.msra.gmra.mrb[0].mxu1 %v212_v49 }
  0x37   :  { %919 = vmatprep.subr.bf16.mxu0 %v1003_v50  ;;  %940 = vmatpush3.bf16.msra.mxu1 %v1002_v52 }
  0x38   :  { %720 = vmatprep.mubr.bf16.mxu0 %v211_v53  ;;  %941 = vmatprep.subr.bf16.mxu1 %v1004_v54 }
  0x39   :  { %760 = vmatprep.mubr.bf16.mxu1 %v215_v56 }
  0x3a   :  { %920 = vmatpush3.bf16.msra.mxu0 %v1005_v55 }
  0x3b   :  { %921 = vmatprep.subr.bf16.mxu0 %v1007_v57  ;;  %942 = vmatpush3.bf16.msra.mxu1 %v1006_v58 }
  0x3c   :  { %943 = vmatprep.subr.bf16.mxu1 %v1008_v59 }
  0x3e   :  { %922 = vmatpush3.bf16.msra.mxu0 %v1009_v60 }
  0x3f   :  { %923 = vmatprep.subr.bf16.mxu0 %v1011_v61  ;;  %944 = vmatpush3.bf16.msra.mxu1 %v1010_v62 }
  0x40   :  { %945 = vmatprep.subr.bf16.mxu1 %v1012_v63 }
  0x42   :  { %924 = vmatpush3.bf16.msra.mxu0 %v1013_v0 }
  0x43   :  { %925 = vmatprep.subr.bf16.mxu0 %v1015_v1  ;;  %946 = vmatpush3.bf16.msra.mxu1 %v1014_v2 }
  0x44   :  { %947 = vmatprep.subr.bf16.mxu1 %v1016_v3 }
  0x46   :  { %926 = vmatpush3.bf16.msra.mxu0 %v1017_v4 }
  0x47   :  { %927 = vmatprep.subr.bf16.mxu0 %v1019_v5  ;;  %948 = vmatpush3.bf16.msra.mxu1 %v1018_v6 }
  0x48   :  { %949 = vmatprep.subr.bf16.mxu1 %v1020_v7 }
  0x4a   :  { %928 = vmatpush3.bf16.msra.mxu0 %v1021_v8 }
  0x4b   :  { %929 = vmatprep.subr.bf16.mxu0 %v1023_v9  ;;  %950 = vmatpush3.bf16.msra.mxu1 %v1022_v10 }
  0x4c   :  { %951 = vmatprep.subr.bf16.mxu1 %v1024_v11 }
  0x4e   :  { %930 = vmatpush3.bf16.msra.mxu0 %v1025_v12 }
  0x4f   :  { %931 = vmatprep.subr.bf16.mxu0 %v1027_v13  ;;  %952 = vmatpush3.bf16.msra.mxu1 %v1026_v14 }
  0x50   :  { %953 = vmatprep.subr.bf16.mxu1 %v1028_v15 }
  0x52   :  { %932 = vmatpush3.bf16.msra.mxu0 %v1029_v16 }
  0x53   :  { %954 = vmatpush3.bf16.msra.mxu1 %v1030_v18 }
  0x55   :  { %721 = vmatmul.mubr.bf16.vlgmr.msra.gmra.mrb[4].mxu0 %v197_v17 }
  0x56   :  { %761 = vmatmul.mubr.bf16.vlgmr.msra.gmra.mrb[4].mxu1 %v213_v19 }
 0x108   :  { %v889_v20 = vpop.f32.mrb[0].mxu0 }
 0x109   :  { %v890_v22 = vpop.f32.mrb[1].mxu0  ;;  %v911_v23 = vpop.f32.mrb[0].mxu1 }
 0x10a   :  { %v891_v24 = vadd.f32 %v890_v22, %v889_v20  ;;  %v892_v25 = vpop.f32.mrb[2].mxu0  ;;  %v912_v26 = vpop.f32.mrb[1].mxu1 }
 0x10b   :  { %v893_v27 = vpop.f32.mrb[3].mxu0  ;;  %v913_v29 = vadd.f32 %v912_v26, %v911_v23  ;;  %v914_v30 = vpop.f32.mrb[2].mxu1 }
 0x10c   :  { %v643_v28 = vadd.f32 %v891_v24, %v806_v21  ;;  %v915_v31 = vpop.f32.mrb[3].mxu1 }
 0x10e   :  { %v683_v32 = vadd.f32 %v913_v29, %v643_v28 }
 0x128   :  { %v933_v33 = vpop.f32.mrb[4].mxu0 }
 0x129   :  { %v934_v34 = vpop.f32.mrb[5].mxu0  ;;  %v955_v35 = vpop.f32.mrb[4].mxu1 }
 0x12a   :  { %v935_v36 = vadd.f32 %v934_v34, %v933_v33  ;;  %v936_v37 = vpop.f32.mrb[6].mxu0  ;;  %v956_v38 = vpop.f32.mrb[5].mxu1 }
 0x12b   :  { %v937_v39 = vpop.f32.mrb[7].mxu0  ;;  %v957_v41 = vadd.f32 %v956_v38, %v955_v35  ;;  %v958_v42 = vpop.f32.mrb[6].mxu1 }
 0x12c   :  { %v723_v40 = vadd.f32 %v935_v36, %v683_v32  ;;  %v959_v43 = vpop.f32.mrb[7].mxu1 }
 0x12e   :  { %v763_v44 = vadd.f32 %v957_v41, %v723_v40 }
 0x130   :  { %v871_v45 = vmul.f32 -1.442695, %v763_v44  ;;  %v776_v46 = vsel %vm775_vm0, %v763_v44, 0.0 }
 0x131   :  { %v777_v47 = vrot.slane %v776_v46, 4 }
 0x132   :  { %1031 = vpow2.f32 %v871_v45 }
 0x133   :  { %v778_v48 = vadd.f32 %v777_v47, %v776_v46 }
 0x135   :  { %v779_v49 = vrot.slane %v778_v48, 2 }
 0x137   :  { %v780_v50 = vadd.f32 %v779_v49, %v778_v48 }
 0x139   :  { %v781_v51 = vrot.slane %v780_v50, 1 }
 0x13b   :  { %v782_v52 = vadd.f32 %v781_v51, %v780_v50 }
 0x13c   :  { %v1032_v53 = vpop.eup %1031 }
 0x13d   :  { %v771_v54 = vadd.f32 1.0, %v1032_v53  ;;  %v872_v55 = vmul.f32 -0.5, %v782_v52 }
 0x13f   :  { %1033 = vrcp.f32 %v771_v54  ;;  %v785_v56 = vmul.f32 1.442695, %v872_v55 }
 0x141   :  { %1035 = vpow2.f32 %v785_v56 }
 0x149   :  { %v1034_v57 = vpop.eup %1033 }
 0x14a   :  { %774 = vst [vmem:[#allocation5] sm:$0x3] %v1034_v57 }
 0x14b   :  { %v1036_v58 = vpop.eup %1035 }
 0x14c   :  { %v787_v59 = vadd.f32 1.0, %v1036_v58 }
 0x14e   :  { %1037 = vrcp.f32 %v787_v59 }
 0x158   :  { %v1038_v60 = vpop.eup %1037 }
 0x159   :  { %790 = vst [vmem:[#allocation5 + $0x2] sm:$0x1] %v1038_v60 }
 0x15a   :  { %1072 = shalt.err (!%p1069_p12)
}
 0x15b   :  { %s1073_s5 = scalar_lea.hbm %s1158_s3, 64 }
 0x15c   :  { %p1074_p13 = scmp.ne.s32.totalorder %s1158_s3, %s1073_s5  ;;  %p1077_p0 = scmp.lt.u32.totalorder %s1073_s5, %s1158_s3 }
 0x15e   :  { %p1079_p1 = pnand %p1077_p0, %p1074_p13 }
 0x160   :  { %1082 = shalt.err (!%p1079_p1)
}
 0x161   :  { %800 = dma.vmem_to_hbm [thread:$0]  %s798_s28, 64, %s1158_s3, [#allocation4]  }
 0x162   :  { %1085 = dma.done.wait [#allocation4], 64  }
 0x163   :  { %1086 = vsyncadd [#allocation4], 4294967232 }
 0x164   :  { %804 = vsyncpa [#allocation3], 1 }
 0x165   :  { %805 = vsyncpa [#allocation4], 1 }

</bundles_post_ra>
